<compile_context>
chip_gen: v7x
topology: tpu7x:2x2x1
jax: 0.10.0
libtpu: 0.0.40
codegen_flags: <defaults>
</compile_context>

<pallas_src>
import math
import functools

import numpy as np
import jax
import jax.numpy as jnp
from jax.experimental import pallas as pl
from jax.experimental.pallas import tpu as pltpu


_NEG_BIG = jnp.float32(-1e30)   # finite "-inf" so online softmax never NaNs


def _pick_tile(dim, target, mult):
    """Largest tile <= target that is a multiple of `mult` and divides `dim`;
    falls back to the full dim (a full-extent block is always legal)."""
    if dim <= target:
        return dim
    t = (target // mult) * mult
    while t >= mult:
        if dim % t == 0:
            return t
        t -= mult
    return dim


def _vmem_limit(block_bytes):
    """~2x the per-step block footprint (double buffering) + margin, clamped to
    32 MiB so it stays safe on v7x (64 MiB VMEM) as well as v5e/v6e (128 MiB)."""
    return int(min(max(2 * block_bytes + (4 << 20), 16 << 20), 32 << 20))


def _detect_causal(mask):
    """True iff `mask` is a concrete (n, n) additive causal mask."""
    try:
        m = np.asarray(mask)
    except Exception:           # tracer / abstract value -> no static skip
        return False
    if m.ndim != 2 or m.shape[0] != m.shape[1]:
        return False
    n = m.shape[0]
    ref = np.where(np.tril(np.ones((n, n), dtype=bool)), 0.0, -np.inf)
    return bool(np.array_equal(m, ref.astype(m.dtype)))


# --------------------------- tiled linear (MXU) -----------------------------

def _matmul_kernel(x_ref, w_ref, b_ref, o_ref, acc_ref, *, activation):
    @pl.when(pl.program_id(2) == 0)
    def _init():
        acc_ref[...] = jnp.zeros_like(acc_ref)

    acc_ref[...] += jnp.dot(
        x_ref[...].astype(jnp.bfloat16),
        w_ref[...].astype(jnp.bfloat16),
        preferred_element_type=jnp.float32,
    )

    @pl.when(pl.program_id(2) == pl.num_programs(2) - 1)
    def _finish():
        y = acc_ref[...] + b_ref[...]
        if activation == "relu":
            y = jnp.maximum(y, 0.0)
        o_ref[...] = y.astype(o_ref.dtype)


def pallas_linear(x, w, b, activation=None, out_dtype=jnp.float32):
    """x:(M,K) @ w:(K,N) + b:(N,) -> (M,N) out_dtype.  Grid-tiled, K-accumulated."""
    M, K = x.shape
    N = w.shape[1]
    tm = _pick_tile(M, 512, 8)
    tn = _pick_tile(N, 1024, 128)
    tk = _pick_tile(K, 2048, 128)
    blk = (tm * tk * x.dtype.itemsize + tk * tn * w.dtype.itemsize + tn * 4
           + tm * tn * jnp.dtype(out_dtype).itemsize + tm * tn * 4)
    kern = functools.partial(_matmul_kernel, activation=activation)
    return pl.pallas_call(
        kern,
        out_shape=jax.ShapeDtypeStruct((M, N), out_dtype),
        grid=(M // tm, N // tn, K // tk),
        in_specs=[
            pl.BlockSpec((tm, tk), lambda i, j, k: (i, k)),
            pl.BlockSpec((tk, tn), lambda i, j, k: (k, j)),
            pl.BlockSpec((1, tn), lambda i, j, k: (0, j)),
        ],
        out_specs=pl.BlockSpec((tm, tn), lambda i, j, k: (i, j)),
        scratch_shapes=[pltpu.VMEM((tm, tn), jnp.float32)],
        compiler_params=pltpu.CompilerParams(
            dimension_semantics=("parallel", "parallel", "arbitrary"),
            vmem_limit_bytes=_vmem_limit(blk),
        ),
    )(x, w, b.reshape(1, N))


# -------------- linear + residual + LayerNorm (fused finalize) --------------

def _linear_res_ln_kernel(x_ref, w_ref, b_ref, r_ref, g_ref, beta_ref,
                          o_ref, acc_ref):
    @pl.when(pl.program_id(1) == 0)
    def _init():
        acc_ref[...] = jnp.zeros_like(acc_ref)

    acc_ref[...] += jnp.dot(
        x_ref[...].astype(jnp.bfloat16),
        w_ref[...].astype(jnp.bfloat16),
        preferred_element_type=jnp.float32,
    )

    @pl.when(pl.program_id(1) == pl.num_programs(1) - 1)
    def _finish():
        y = acc_ref[...] + b_ref[...] + r_ref[...]
        mu = jnp.mean(y, axis=-1, keepdims=True)
        var = jnp.mean(jnp.square(y - mu), axis=-1, keepdims=True)
        o_ref[...] = ((y - mu) * jax.lax.rsqrt(var + 1e-5) * g_ref[...]
                      + beta_ref[...]).astype(o_ref.dtype)


def pallas_linear_residual_ln(x, w, b, res, g, beta):
    """LayerNorm(res + x @ w + b); N == dim_model kept un-tiled (lane-dense)."""
    M, K = x.shape
    N = w.shape[1]
    tm = _pick_tile(M, 512, 8)
    tk = _pick_tile(K, 2048, 128)
    blk = (tm * tk * x.dtype.itemsize + tk * N * w.dtype.itemsize
           + tm * N * res.dtype.itemsize + 3 * N * 4 + tm * N * 4 * 2)
    return pl.pallas_call(
        _linear_res_ln_kernel,
        out_shape=jax.ShapeDtypeStruct((M, N), jnp.float32),
        grid=(M // tm, K // tk),
        in_specs=[
            pl.BlockSpec((tm, tk), lambda i, k: (i, k)),
            pl.BlockSpec((tk, N), lambda i, k: (k, 0)),
            pl.BlockSpec((1, N), lambda i, k: (0, 0)),
            pl.BlockSpec((tm, N), lambda i, k: (i, 0)),
            pl.BlockSpec((1, N), lambda i, k: (0, 0)),
            pl.BlockSpec((1, N), lambda i, k: (0, 0)),
        ],
        out_specs=pl.BlockSpec((tm, N), lambda i, k: (i, 0)),
        scratch_shapes=[pltpu.VMEM((tm, N), jnp.float32)],
        compiler_params=pltpu.CompilerParams(
            dimension_semantics=("parallel", "arbitrary"),
            vmem_limit_bytes=_vmem_limit(blk),
        ),
    )(x, w, b.reshape(1, N), res, g.reshape(1, N), beta.reshape(1, N))


# ---------------- fused FFN + residual + LayerNorm (one kernel) --------------

def _ffn_res_ln_kernel(x_ref, w1_ref, b1_ref, w2_ref, b2_ref, r_ref,
                       g_ref, beta_ref, o_ref, acc_ref):
    @pl.when(pl.program_id(1) == 0)
    def _init():
        acc_ref[...] = jnp.zeros_like(acc_ref)

    # (tm, tf) intermediate lives only in VMEM/vregs — never hits HBM.
    h = jnp.dot(x_ref[...].astype(jnp.bfloat16), w1_ref[...].astype(jnp.bfloat16),
                preferred_element_type=jnp.float32) + b1_ref[...]
    h = jnp.maximum(h, 0.0).astype(jnp.bfloat16)
    acc_ref[...] += jnp.dot(h, w2_ref[...].astype(jnp.bfloat16),
                            preferred_element_type=jnp.float32)

    @pl.when(pl.program_id(1) == pl.num_programs(1) - 1)
    def _finish():
        y = acc_ref[...] + b2_ref[...] + r_ref[...]
        mu = jnp.mean(y, axis=-1, keepdims=True)
        var = jnp.mean(jnp.square(y - mu), axis=-1, keepdims=True)
        o_ref[...] = ((y - mu) * jax.lax.rsqrt(var + 1e-5) * g_ref[...]
                      + beta_ref[...]).astype(o_ref.dtype)


def pallas_ffn_residual_ln(x, w1, b1, w2, b2, res, g, beta):
    """LayerNorm(res + ReLU(x @ w1 + b1) @ w2 + b2), dim_ff tiled as reduction."""
    M, D = x.shape
    F = w1.shape[1]
    tm = _pick_tile(M, 256, 8)
    tf = _pick_tile(F, 512, 128)
    blk = (tm * D * x.dtype.itemsize + D * tf * 2 + tf * 4 + tf * D * 2 + D * 4
           + tm * D * res.dtype.itemsize + 2 * D * 4 + tm * D * 4 * 2
           + tm * tf * 4)
    return pl.pallas_call(
        _ffn_res_ln_kernel,
        out_shape=jax.ShapeDtypeStruct((M, D), jnp.float32),
        grid=(M // tm, F // tf),
        in_specs=[
            pl.BlockSpec((tm, D), lambda i, j: (i, 0)),
            pl.BlockSpec((D, tf), lambda i, j: (0, j)),
            pl.BlockSpec((1, tf), lambda i, j: (0, j)),
            pl.BlockSpec((tf, D), lambda i, j: (j, 0)),
            pl.BlockSpec((1, D), lambda i, j: (0, 0)),
            pl.BlockSpec((tm, D), lambda i, j: (i, 0)),
            pl.BlockSpec((1, D), lambda i, j: (0, 0)),
            pl.BlockSpec((1, D), lambda i, j: (0, 0)),
        ],
        out_specs=pl.BlockSpec((tm, D), lambda i, j: (i, 0)),
        scratch_shapes=[pltpu.VMEM((tm, D), jnp.float32)],
        compiler_params=pltpu.CompilerParams(
            dimension_semantics=("parallel", "arbitrary"),
            vmem_limit_bytes=_vmem_limit(blk),
        ),
    )(x, w1, b1.reshape(1, F), w2, b2.reshape(1, D),
      res, g.reshape(1, D), beta.reshape(1, D))


# ------------------------------ plain LayerNorm ------------------------------

def _ln_kernel(x_ref, g_ref, b_ref, o_ref):
    x = x_ref[...]
    mu = jnp.mean(x, axis=-1, keepdims=True)
    var = jnp.mean(jnp.square(x - mu), axis=-1, keepdims=True)
    o_ref[...] = (x - mu) * jax.lax.rsqrt(var + 1e-5) * g_ref[...] + b_ref[...]


def pallas_layernorm(x, p):
    B, S, D = x.shape
    M = B * S
    tm = _pick_tile(M, 2048, 8)
    out = pl.pallas_call(
        _ln_kernel,
        out_shape=jax.ShapeDtypeStruct((M, D), jnp.float32),
        grid=(M // tm,),
        in_specs=[pl.BlockSpec((tm, D), lambda i: (i, 0)),
                  pl.BlockSpec((1, D), lambda i: (0, 0)),
                  pl.BlockSpec((1, D), lambda i: (0, 0))],
        out_specs=pl.BlockSpec((tm, D), lambda i: (i, 0)),
        compiler_params=pltpu.CompilerParams(dimension_semantics=("parallel",)),
    )(x.reshape(M, D), p["g"].reshape(1, D), p["b"].reshape(1, D))
    return out.reshape(B, S, D)


# ------------------------- flash multi-head attention ------------------------

def _flash_mha_kernel(*refs, num_heads, head_dim, scale, has_mask, has_kpm,
                      causal, tq, tk):
    it = iter(refs)
    q_ref = next(it)
    k_ref = next(it)
    v_ref = next(it)
    mask_ref = next(it) if has_mask else None
    kpm_ref = next(it) if has_kpm else None
    o_ref = next(it)
    m_ref = next(it)        # (tq, H) running max
    l_ref = next(it)        # (tq, H) running denom
    acc_ref = next(it)      # (tq, D) running numerator (lane-dense)

    qi = pl.program_id(1)
    ki = pl.program_id(2)
    H, Dh = num_heads, head_dim

    @pl.when(ki == 0)
    def _init():
        m_ref[...] = jnp.full_like(m_ref, -jnp.inf)
        l_ref[...] = jnp.zeros_like(l_ref)
        acc_ref[...] = jnp.zeros_like(acc_ref)

    def _compute():
        bias = None
        if has_mask:
            bias = mask_ref[...]                 # (tq, tk)
        if has_kpm:
            kpm = kpm_ref[0]                     # (1, tk), broadcasts over tq
            bias = kpm if bias is None else bias + kpm

        for h in range(H):                       # all heads per grid step
            qh = q_ref[0, :, h * Dh:(h + 1) * Dh].astype(jnp.bfloat16)  # (tq,Dh)
            kh = k_ref[0, :, h * Dh:(h + 1) * Dh].astype(jnp.bfloat16)  # (tk,Dh)
            vh = v_ref[0, :, h * Dh:(h + 1) * Dh].astype(jnp.bfloat16)  # (tk,Dh)

            s = jax.lax.dot_general(
                qh, kh, (((1,), (1,)), ((), ())),
                preferred_element_type=jnp.float32) * scale             # (tq,tk)
            if bias is not None:
                s = s + bias

            m_prev = m_ref[:, h:h + 1]                                  # (tq,1)
            m_new = jnp.maximum(m_prev, jnp.max(s, axis=-1, keepdims=True))
            alpha = jnp.exp(m_prev - m_new)
            p = jnp.exp(s - m_new)                                      # (tq,tk)
            l_ref[:, h:h + 1] = (alpha * l_ref[:, h:h + 1]
                                 + jnp.sum(p, axis=-1, keepdims=True))
            acc_ref[:, h * Dh:(h + 1) * Dh] = (
                alpha * acc_ref[:, h * Dh:(h + 1) * Dh]
                + jnp.dot(p.astype(jnp.bfloat16), vh,
                          preferred_element_type=jnp.float32))
            m_ref[:, h:h + 1] = m_new

    if causal:
        # Skip key tiles strictly above this query tile's diagonal band.
        pl.when(ki * tk <= qi * tq + (tq - 1))(_compute)
    else:
        _compute()

    @pl.when(ki == pl.num_programs(2) - 1)
    def _finish():
        for h in range(H):      # lane-dense (1, tq, D) output block
            o_ref[0, :, h * Dh:(h + 1) * Dh] = (
                acc_ref[:, h * Dh:(h + 1) * Dh]
                * pl.reciprocal(l_ref[:, h:h + 1], approx=True)
            ).astype(o_ref.dtype)


def pallas_flash_attention(q, k, v, mask_bias, kpm_bias, *, num_heads, scale,
                           causal=False):
    """q:(B,Sq,D), k/v:(B,Sk,D) bf16.  mask_bias:(Sq,Sk)|None, kpm_bias:(B,1,Sk)|None.
    Returns (B, Sq, D) bf16 (heads merged); no (B*H,Sq,Sk) scores in HBM."""
    B, Sq, D = q.shape
    Sk = k.shape[1]
    H = num_heads
    Dh = D // H
    tq = _pick_tile(Sq, 256, 8)
    tk = _pick_tile(Sk, 512, 128)
    has_mask = mask_bias is not None
    has_kpm = kpm_bias is not None

    in_specs = [
        pl.BlockSpec((1, tq, D), lambda b, qi, ki: (b, qi, 0)),
        pl.BlockSpec((1, tk, D), lambda b, qi, ki: (b, ki, 0)),
        pl.BlockSpec((1, tk, D), lambda b, qi, ki: (b, ki, 0)),
    ]
    inputs = [q, k, v]
    if has_mask:
        in_specs.append(pl.BlockSpec((tq, tk), lambda b, qi, ki: (qi, ki)))
        inputs.append(mask_bias)
    if has_kpm:
        in_specs.append(pl.BlockSpec((1, 1, tk), lambda b, qi, ki: (b, 0, ki)))
        inputs.append(kpm_bias)

    blk = (tq * D * q.dtype.itemsize + 2 * tk * D * k.dtype.itemsize
           + (tq * tk * 4 if has_mask else 0) + (tk * 4 if has_kpm else 0)
           + tq * D * 2 + tq * D * 4 + 2 * tq * H * 4)

    kern = functools.partial(_flash_mha_kernel, num_heads=H, head_dim=Dh,
                             scale=scale, has_mask=has_mask, has_kpm=has_kpm,
                             causal=causal, tq=tq, tk=tk)
    return pl.pallas_call(
        kern,
        out_shape=jax.ShapeDtypeStruct((B, Sq, D), jnp.bfloat16),
        grid=(B, Sq // tq, Sk // tk),
        in_specs=in_specs,
        out_specs=pl.BlockSpec((1, tq, D), lambda b, qi, ki: (b, qi, 0)),
        scratch_shapes=[
            pltpu.VMEM((tq, H), jnp.float32),    # running max
            pltpu.VMEM((tq, H), jnp.float32),    # running denom
            pltpu.VMEM((tq, D), jnp.float32),    # running numerator (lane-dense)
        ],
        compiler_params=pltpu.CompilerParams(
            dimension_semantics=("parallel", "parallel", "arbitrary"),
            vmem_limit_bytes=_vmem_limit(blk),
        ),
    )(*inputs)


# ------------------------------ model pieces --------------------------------

def multihead_attention(x_q, x_kv, p, num_heads, residual, ln_p,
                        attn_mask=None, key_padding_mask=None, is_self=True):
    """Batch-first (B,S,D).  Fused QKV projection (bf16 out), in-kernel masking,
    out-projection fused with residual-add + LayerNorm."""
    B, Sq, D = x_q.shape
    Sk = x_kv.shape[1]
    H = num_heads
    Dh = D // H
    w = p["in_proj_w_t"]          # (D, 3D) bf16
    b = p["in_proj_b"]            # (3D,)   f32

    if is_self:
        qkv = pallas_linear(x_q.reshape(B * Sq, D), w, b,
                            out_dtype=jnp.bfloat16)                   # (B*Sq,3D)
        q = qkv[:, :D].reshape(B, Sq, D)
        k = qkv[:, D:2 * D].reshape(B, Sk, D)
        v = qkv[:, 2 * D:].reshape(B, Sk, D)
    else:
        q = pallas_linear(x_q.reshape(B * Sq, D), w[:, :D], b[:D],
                          out_dtype=jnp.bfloat16).reshape(B, Sq, D)
        kv = pallas_linear(x_kv.reshape(B * Sk, D), w[:, D:], b[D:],
                           out_dtype=jnp.bfloat16)                    # (B*Sk,2D)
        k = kv[:, :D].reshape(B, Sk, D)
        v = kv[:, D:].reshape(B, Sk, D)

    mask_bias = None
    causal = False
    if attn_mask is not None:
        causal = _detect_causal(attn_mask)
        # clamp -inf to a large finite negative: avoids NaN in online softmax
        mask_bias = jnp.maximum(attn_mask.astype(jnp.float32), _NEG_BIG)
    kpm_bias = None
    if key_padding_mask is not None:
        kpm_bias = jnp.where(key_padding_mask, _NEG_BIG,
                             jnp.float32(0.0)).reshape(B, 1, Sk)

    attn = pallas_flash_attention(q, k, v, mask_bias, kpm_bias,
                                  num_heads=H, scale=1.0 / math.sqrt(Dh),
                                  causal=causal)                       # (B,Sq,D) bf16
    out = pallas_linear_residual_ln(attn.reshape(B * Sq, D),
                                    p["out_w_t"], p["out_b"],
                                    residual.reshape(B * Sq, D),
                                    ln_p["g"], ln_p["b"])
    return out.reshape(B, Sq, D)


def encoder_layer(x, p, H, src_kpm):
    x = multihead_attention(x, x, p["self_attn"], H, residual=x,
                            ln_p=p["norm1"], key_padding_mask=src_kpm,
                            is_self=True)
    B, S, D = x.shape
    xf = x.reshape(B * S, D)
    x = pallas_ffn_residual_ln(xf, p["lin1_w_t"], p["lin1_b"],
                               p["lin2_w_t"], p["lin2_b"], xf,
                               p["norm2"]["g"], p["norm2"]["b"]).reshape(B, S, D)
    return x


def decoder_layer(x, memory, p, H, tgt_mask, tgt_kpm):
    x = multihead_attention(x, x, p["self_attn"], H, residual=x,
                            ln_p=p["norm1"], attn_mask=tgt_mask,
                            key_padding_mask=tgt_kpm, is_self=True)
    x = multihead_attention(x, memory, p["cross_attn"], H, residual=x,
                            ln_p=p["norm2"], is_self=False)
    B, S, D = x.shape
    xf = x.reshape(B * S, D)
    x = pallas_ffn_residual_ln(xf, p["lin1_w_t"], p["lin1_b"],
                               p["lin2_w_t"], p["lin2_b"], xf,
                               p["norm3"]["g"], p["norm3"]["b"]).reshape(B, S, D)
    return x


def transformer_forward(params, src_tokens, tgt_tokens,
                        tgt_mask=None, src_pad_mask=None, tgt_pad_mask=None):
    D = params["dim_model"]
    H = params["num_heads"]
    sqrt_d = math.sqrt(D)

    src = jnp.take(params["embedding"], src_tokens, axis=0) * sqrt_d  # (B,Ss,D)
    tgt = jnp.take(params["embedding"], tgt_tokens, axis=0) * sqrt_d  # (B,St,D)

    # PositionalEncoding: pe is (max_len, 1, D), indexed by dim 0 of the
    # batch-first embedding — faithfully reproducing the reference module,
    # which applies PE *before* the permute.
    pe = params["pos_encoding"]
    src = src + pe[: src.shape[0]]
    tgt = tgt + pe[: tgt.shape[0]]
    # dropout: identity (eval mode)

    # Computation stays batch-first (B, S, D); identical math to the seq-first
    # nn.Transformer layout.  Only the final output is permuted to match.
    memory = src
    for lp in params["encoder_layers"]:
        memory = encoder_layer(memory, lp, H, src_pad_mask)
    memory = pallas_layernorm(memory, params["encoder_norm"])

    x = tgt
    for lp in params["decoder_layers"]:
        x = decoder_layer(x, memory, lp, H, tgt_mask, tgt_pad_mask)
    x = pallas_layernorm(x, params["decoder_norm"])

    B, St, _ = x.shape
    out = pallas_linear(x.reshape(B * St, D), params["out_w_t"], params["out_b"])
    return out.reshape(B, St, params["num_tokens"]).transpose(1, 0, 2)


# ----------------------------- parameter init -------------------------------

def build_pos_encoding(max_len, dim_model):
    positions = jnp.arange(max_len, dtype=jnp.float32)[:, None]
    div = jnp.exp(jnp.arange(0, dim_model, 2, dtype=jnp.float32)
                  * (-math.log(10000.0) / dim_model))
    pe = jnp.zeros((max_len, dim_model), jnp.float32)
    pe = pe.at[:, 0::2].set(jnp.sin(positions * div))
    pe = pe.at[:, 1::2].set(jnp.cos(positions * div))
    return pe[:, None, :]  # (max_len, 1, D)


def init_params(key, num_tokens, dim_model, num_heads,
                num_encoder_layers, num_decoder_layers,
                dim_ff=2048, max_len=5000):
    ks = iter(jax.random.split(key, 128))

    def w(shape, dtype=jnp.bfloat16):   # matmul weights stored bf16 for MXU
        return (jax.random.normal(next(ks), shape, jnp.float32) * 0.02).astype(dtype)

    def mha():
        return dict(in_proj_w_t=w((dim_model, 3 * dim_model)),
                    in_proj_b=jnp.zeros((3 * dim_model,), jnp.float32),
                    out_w_t=w((dim_model, dim_model)),
                    out_b=jnp.zeros((dim_model,), jnp.float32))

    def ln():
        return dict(g=jnp.ones((dim_model,), jnp.float32),
                    b=jnp.zeros((dim_model,), jnp.float32))

    def enc_layer():
        return dict(self_attn=mha(),
                    lin1_w_t=w((dim_model, dim_ff)),
                    lin1_b=jnp.zeros((dim_ff,), jnp.float32),
                    lin2_w_t=w((dim_ff, dim_model)),
                    lin2_b=jnp.zeros((dim_model,), jnp.float32),
                    norm1=ln(), norm2=ln())

    def dec_layer():
        return dict(self_attn=mha(), cross_attn=mha(),
                    lin1_w_t=w((dim_model, dim_ff)),
                    lin1_b=jnp.zeros((dim_ff,), jnp.float32),
                    lin2_w_t=w((dim_ff, dim_model)),
                    lin2_b=jnp.zeros((dim_model,), jnp.float32),
                    norm1=ln(), norm2=ln(), norm3=ln())

    return dict(
        dim_model=dim_model, num_heads=num_heads, num_tokens=num_tokens,
        embedding=w((num_tokens, dim_model), jnp.float32),
        pos_encoding=build_pos_encoding(max_len, dim_model),
        encoder_layers=[enc_layer() for _ in range(num_encoder_layers)],
        decoder_layers=[dec_layer() for _ in range(num_decoder_layers)],
        encoder_norm=ln(), decoder_norm=ln(),
        out_w_t=w((dim_model, num_tokens)),
        out_b=jnp.zeros((num_tokens,), jnp.float32),
    )


def get_tgt_mask(size):
    tril = jnp.tril(jnp.ones((size, size), jnp.float32)) == 1
    return jnp.where(tril, 0.0, -jnp.inf).astype(jnp.float32)


# ---------------------------------- main -------------------------------------

if __name__ == "__main__":
    num_tokens, dim_model, num_heads = 32, 32, 4
    num_enc, num_dec = 2, 2
    B, S_src, S_tgt = 2, 8, 8

    key = jax.random.PRNGKey(0)
    pkey, skey, tkey = jax.random.split(key, 3)
    params = init_params(pkey, num_tokens, dim_model, num_heads,
                         num_enc, num_dec)

    src = jax.random.randint(skey, (B, S_src), 0, num_tokens, dtype=jnp.int32)
    tgt = jax.random.randint(tkey, (B, S_tgt), 0, num_tokens, dtype=jnp.int32)
    tgt_mask = get_tgt_mask(S_tgt)

    out = transformer_forward(params, src, tgt, tgt_mask=tgt_mask)
    out = jax.block_until_ready(out)

    assert out.shape == (S_tgt, B, num_tokens), out.shape
    assert bool(jnp.all(jnp.isfinite(out)))
    print("KERNEL_OK")
</pallas_src>

<mosaic_0001>
module attributes {stable_mosaic.version = 11 : i64} {
  func.func @_matmul_kernel(%arg0: i32, %arg1: i32, %arg2: i32, %arg3: memref<16x32xf32, #tpu.memory_space<vmem>>, %arg4: memref<32x96xbf16, #tpu.memory_space<vmem>>, %arg5: memref<1x96xf32, #tpu.memory_space<vmem>>, %arg6: memref<16x96xbf16, #tpu.memory_space<vmem>>, %arg7: memref<16x96xf32, #tpu.memory_space<vmem>>) attributes {dimension_semantics = [#tpu.dimension_semantics<parallel>, #tpu.dimension_semantics<parallel>, #tpu.dimension_semantics<arbitrary>], iteration_bounds = array<i64: 1, 1, 1>, scalar_prefetch = 0 : i64, scratch_operands = 1 : i64, tpu.core_type = #tpu.core_type<tc>, window_params = [{transform_indices = @transform_0, window_bounds = array<i64: 16, 32>}, {transform_indices = @transform_1, window_bounds = array<i64: 32, 96>}, {transform_indices = @transform_2, window_bounds = array<i64: 1, 96>}, {transform_indices = @transform_3, window_bounds = array<i64: 16, 96>}]} {
    %c0_i32 = arith.constant 0 : i32
    %0 = arith.cmpi eq, %arg2, %c0_i32 : i32
    %1 = arith.extui %0 : i1 to i32
    %c0_i32_0 = arith.constant 0 : i32
    %2 = arith.cmpi ne, %1, %c0_i32_0 : i32
    scf.if %2 {
      %cst_10 = arith.constant 0.000000e+00 : f32
      %13 = vector.broadcast %cst_10 : f32 to vector<16x96xf32>
      %c0_11 = arith.constant 0 : index
      %c0_12 = arith.constant 0 : index
      %14 = vector.load %arg7[%c0_11, %c0_12] : memref<16x96xf32, #tpu.memory_space<vmem>>, vector<16x96xf32>
      tpu.vector_store %arg7[%c0_11, %c0_12], %13 {strides = array<i32>} : memref<16x96xf32, #tpu.memory_space<vmem>>, vector<16x96xf32>,
    } else {
    }
    %c0 = arith.constant 0 : index
    %c0_1 = arith.constant 0 : index
    %3 = vector.load %arg7[%c0, %c0_1] : memref<16x96xf32, #tpu.memory_space<vmem>>, vector<16x96xf32>
    %c0_2 = arith.constant 0 : index
    %c0_3 = arith.constant 0 : index
    %4 = vector.load %arg3[%c0_2, %c0_3] : memref<16x32xf32, #tpu.memory_space<vmem>>, vector<16x32xf32>
    %5 = arith.truncf %4 : vector<16x32xf32> to vector<16x32xbf16>
    %c0_4 = arith.constant 0 : index
    %c0_5 = arith.constant 0 : index
    %6 = vector.load %arg4[%c0_4, %c0_5] : memref<32x96xbf16, #tpu.memory_space<vmem>>, vector<32x96xbf16>
    %cst = arith.constant dense<0.000000e+00> : vector<16x96xf32>
    %7 = tpu.matmul %5, %6, %cst {dimension_numbers = #tpu.dot_dimension_numbers<[1], [0], [0], [1], [0, 0, 1, 1], [], []>} : vector<16x32xbf16>, vector<32x96xbf16>, vector<16x96xf32> -> vector<16x96xf32>
    %8 = arith.addf %3, %7 : vector<16x96xf32>
    %c0_6 = arith.constant 0 : index
    %c0_7 = arith.constant 0 : index
    %9 = vector.load %arg7[%c0_6, %c0_7] : memref<16x96xf32, #tpu.memory_space<vmem>>, vector<16x96xf32>
    tpu.vector_store %arg7[%c0_6, %c0_7], %8 {strides = array<i32>} : memref<16x96xf32, #tpu.memory_space<vmem>>, vector<16x96xf32>,
    %c0_i32_8 = arith.constant 0 : i32
    %10 = arith.cmpi eq, %arg2, %c0_i32_8 : i32
    %11 = arith.extui %10 : i1 to i32
    %c0_i32_9 = arith.constant 0 : i32
    %12 = arith.cmpi ne, %11, %c0_i32_9 : i32
    scf.if %12 {
      %c0_10 = arith.constant 0 : index
      %c0_11 = arith.constant 0 : index
      %13 = vector.load %arg7[%c0_10, %c0_11] : memref<16x96xf32, #tpu.memory_space<vmem>>, vector<16x96xf32>
      %c0_12 = arith.constant 0 : index
      %c0_13 = arith.constant 0 : index
      %14 = vector.load %arg5[%c0_12, %c0_13] : memref<1x96xf32, #tpu.memory_space<vmem>>, vector<1x96xf32>
      %15 = vector.broadcast %14 : vector<1x96xf32> to vector<16x96xf32>
      %16 = arith.addf %13, %15 : vector<16x96xf32>
      %17 = arith.truncf %16 : vector<16x96xf32> to vector<16x96xbf16>
      %c0_14 = arith.constant 0 : index
      %c0_15 = arith.constant 0 : index
      %18 = vector.load %arg6[%c0_14, %c0_15] : memref<16x96xbf16, #tpu.memory_space<vmem>>, vector<16x96xbf16>
      tpu.vector_store %arg6[%c0_14, %c0_15], %17 {strides = array<i32>} : memref<16x96xbf16, #tpu.memory_space<vmem>>, vector<16x96xbf16>,
    } else {
    }
    return
  }
  func.func @transform_0(%arg0: i32, %arg1: i32, %arg2: i32) -> (i32, i32) {
    %c0_i32 = arith.constant 0 : i32
    return %arg0, %arg2 : i32, i32
  }
  func.func @transform_1(%arg0: i32, %arg1: i32, %arg2: i32) -> (i32, i32) {
    %c0_i32 = arith.constant 0 : i32
    return %arg2, %arg1 : i32, i32
  }
  func.func @transform_2(%arg0: i32, %arg1: i32, %arg2: i32) -> (i32, i32) {
    %c0_i32 = arith.constant 0 : i32
    %c0_i32_0 = arith.constant 0 : i32
    return %c0_i32, %arg1 : i32, i32
  }
  func.func @transform_3(%arg0: i32, %arg1: i32, %arg2: i32) -> (i32, i32) {
    %c0_i32 = arith.constant 0 : i32
    return %arg0, %arg1 : i32, i32
  }
}

</mosaic_0001>

<bundles_post_ra>
// kernel: tpu_custom_call.1
= control target key start
LH: loop header
LB: loop body
LE: loop exit
PB: predicated region body
PF: predicated region fallthrough
CT: control target
= control target key end

     0   :  { %8 = vsyncpa [#allocation4], 0  ;;  %s345_s0 = inlined_call_operand.hbm [shape: f32[16,32], index: 0, kind: input, shape index: {}]   ;;  %s346_s1 = inlined_call_operand.hbm [shape: bf16[32,96], index: 1, kind: input, shape index: {}]   ;;  %s347_s2 = inlined_call_operand.vmem [shape: f32[1,96], index: 2, kind: input, shape index: {}]   ;;  %s348_s3 = inlined_call_operand.hbm [shape: bf16[16,96], index: 3, kind: output, shape index: {}]  }
   0x1   :  { %9 = vsyncpa [#allocation7], 0 }
   0x2   :  { %10 = vsyncpa [#allocation5], 0  ;;  %s267_s12 = smov [#allocation3]   ;;  %s195_s16 = scalar_lea.hbm %s345_s0, 256 }
   0x3   :  { %s16_s13 = sshll.u32 %s267_s12, 4  ;;  %p196_p0 = scmp.ne.s32.totalorder %s345_s0, %s195_s16  ;;  %s17_s13 = int_to_ptr.vmem [resolvable:$true] %s16_s13 }
   0x4   :  { %p199_p1 = scmp.lt.u32.totalorder %s195_s16, %s345_s0 }
   0x6   :  { %p201_p2 = pnand %p199_p1, %p196_p0 }
   0x8   :  { %204 = shalt.err (!%p201_p2)
}
   0x9   :  { %s205_s21 = scalar_lea.vmem %s17_s13, 256  ;;  %p210_p4 = scmp.lt.s32.totalorder %s17_s13, %s17_s13 }
   0xa   :  { %p206_p3 = scmp.ne.s32.totalorder %s17_s13, %s205_s21  ;;  %p211_p5 = scmp.lt.s32.totalorder %s205_s21, %s205_s21 }
   0xc   :  { %p212_p6 = por %p211_p5, %p210_p4 }
   0xe   :  { %p213_p7 = pnand %p212_p6, %p206_p3 }
  0x10   :  { %216 = shalt.err (!%p213_p7)
}
  0x11   :  { %s268_s22 = smov 128   ;;  %s269_s23 = smov 8  }
  0x12   :  { %22 = dma.hbm_to_vmem [thread:$0]  %s345_s0, 256, %s17_s13, [#allocation4], %s268_s22, %s268_s22, %s269_s23  }
  0x13   :  { %s270_s26 = smov [#allocation6]   ;;  %s217_s30 = scalar_lea.hbm %s346_s1, 256 }
  0x14   :  { %s28_s27 = sshll.u32 %s270_s26, 4  ;;  %p218_p8 = scmp.ne.s32.totalorder %s346_s1, %s217_s30  ;;  %s29_s27 = int_to_ptr.vmem [resolvable:$true] %s28_s27 }
  0x15   :  { %p221_p9 = scmp.lt.u32.totalorder %s217_s30, %s346_s1 }
  0x17   :  { %p223_p10 = pnand %p221_p9, %p218_p8 }
  0x19   :  { %226 = shalt.err (!%p223_p10)
}
  0x1a   :  { %s227_s8 = scalar_lea.vmem %s29_s27, 256  ;;  %p232_p12 = scmp.lt.s32.totalorder %s29_s27, %s29_s27 }
  0x1b   :  { %p228_p11 = scmp.ne.s32.totalorder %s29_s27, %s227_s8  ;;  %p233_p13 = scmp.lt.s32.totalorder %s227_s8, %s227_s8 }
  0x1d   :  { %p234_p0 = por %p233_p13, %p232_p12 }
  0x1f   :  { %p235_p1 = pnand %p234_p0, %p228_p11 }
  0x21   :  { %238 = shalt.err (!%p235_p1)
}
  0x22   :  { %s271_s0 = smov 64   ;;  %s272_s9 = smov 4  }
  0x23   :  { %34 = dma.hbm_to_vmem [thread:$0]  %s346_s1, 256, %s29_s27, [#allocation7], %s271_s0, %s271_s0, %s272_s9  }
  0x24   :  { %261 = dma.done.wait [#allocation4], 256  }
  0x25   :  { %262 = vsyncadd [#allocation4], 4294967040 }
  0x26   :  { %263 = dma.done.wait [#allocation7], 256  }
  0x27   :  { %264 = vsyncadd [#allocation7], 4294967040  ;;  %vm48_vm0 = vcmask 785408   ;;  %v273_v0 = vmov 0.0   ;;  %vm274_vm1 = vmmov 0   ;;  %v193_v1 = vld [vmem:[#allocation6] sm:$0xff]  }
  0x28   :  { %49 = vst.msk [vmem:[#allocation2] sm:$0xff] %vm48_vm0, %v273_v0  ;;  %50 = vst.msk [vmem:[#allocation2 + $0x8] sm:$0xff] %vm48_vm0, %v273_v0  ;;  %176 = vmatprep.subr.bf16.mxu0 %v273_v0  ;;  %180 = vmatprep.mubr.msk.bf16.mxu0 %vm274_vm1, %v273_v0  ;;  %v194_v2 = vld [vmem:[#allocation6 + $0x8] sm:$0xff]   ;;  %v53_v3 = vld [vmem:[#allocation3] sm:$0xff]  ;;  %vm72_vm2 = vcmask 261120   ;;  %vm144_vm3 = vcmask 781312  }
  0x29   :  { %177 = vmatpush3.bf16.msra.mxu0 %v193_v1  ;;  %v54_v4 = vld [vmem:[#allocation3 + $0x8] sm:$0xff]  ;;  %v168_v14 = vld [vmem:[%s347_s2] ss:$0 sm:$0xff]  ;;  %s275_s13 = smov [#allocation8]  }
  0x2a   :  { %178 = vmatprep.subr.bf16.mxu0 %v273_v0  ;;  %v55_v5 = vpack.c.bf16 %v54_v4, %v53_v3  ;;  %s152_s14 = sshll.u32 %s275_s13, 4  ;;  %s153_s14 = int_to_ptr.vmem [resolvable:$true] %s152_s14 }
  0x2b   :  { %s239_s15 = scalar_lea.vmem %s153_s14, 128  ;;  %p244_p3 = scmp.lt.s32.totalorder %s153_s14, %s153_s14 }
  0x2c   :  { %p240_p2 = scmp.ne.s32.totalorder %s153_s14, %s239_s15  ;;  %p245_p4 = scmp.lt.s32.totalorder %s239_s15, %s239_s15 }
  0x2d   :  { %179 = vmatpush3.bf16.msra.mxu0 %v194_v2 }
  0x2e   :  { %p246_p5 = por %p245_p4, %p244_p3 }
  0x2f   :  { %v51_v6 = vld [vmem:[#allocation2] sm:$0xff]  ;;  %v52_v8 = vld [vmem:[#allocation2 + $0x8] sm:$0xff] }
  0x30   :  { %181 = vmatmul.mubr.msk.bf16.vlgmr.msra.gmra.mrb[0].mxu0 %vm72_vm2, %v55_v5  ;;  %p247_p6 = pnand %p246_p5, %p240_p2 }
 0x103   :  { %v110_v7 = vpop.f32.mrb[0].mxu0 }
 0x104   :  { %v117_v9 = vadd.f32 %v110_v7, %v51_v6  ;;  %v182_v10 = vpop.f32.mrb[1].mxu0 }
 0x105   :  { %v113_v11 = vpop.f32.mrb[2].mxu0 }
 0x106   :  { %120 = vst.msk [vmem:[#allocation2] sm:$0xff] %vm48_vm0, %v117_v9  ;;  %v118_v12 = vadd.f32 %v113_v11, %v52_v8  ;;  %v183_v13 = vpop.f32.mrb[3].mxu0 }
 0x108   :  { %121 = vst.msk [vmem:[#allocation2 + $0x8] sm:$0xff] %vm48_vm0, %v118_v12 }
 0x10d   :  { %v125_v15 = vld [vmem:[#allocation2] sm:$0xff] }
 0x10e   :  { %v134_v16 = vadd.f32 %v168_v14, %v125_v15 }
 0x10f   :  { %v126_v17 = vld [vmem:[#allocation2 + $0x8] sm:$0xff] }
 0x110   :  { %v135_v18 = vadd.f32 %v168_v14, %v126_v17  ;;  %v171_v19 = vpack.c.bf16 %v134_v16, %v134_v16 }
 0x112   :  { %v172_v20 = vpack.c.bf16 %v135_v18, %v135_v18  ;;  %145 = vst.msk [vmem:[#allocation8] sm:$0xf] %vm144_vm3, %v171_v19 }
 0x114   :  { %146 = vst.msk [vmem:[#allocation8 + $0x4] sm:$0xf] %vm144_vm3, %v172_v20 }
 0x115   :  { %250 = shalt.err (!%p247_p6)
}
 0x116   :  { %s251_s17 = scalar_lea.hbm %s348_s3, 128 }
 0x117   :  { %p252_p7 = scmp.ne.s32.totalorder %s348_s3, %s251_s17  ;;  %p255_p8 = scmp.lt.u32.totalorder %s251_s17, %s348_s3 }
 0x119   :  { %p257_p9 = pnand %p255_p8, %p252_p7 }
 0x11b   :  { %260 = shalt.err (!%p257_p9)
}
 0x11c   :  { %158 = dma.vmem_to_hbm [thread:$0]  %s153_s14, 128, %s348_s3, [#allocation5], %s271_s0, %s271_s0, %s272_s9  }
 0x11d   :  { %265 = dma.done.wait [#allocation5], 128  }
 0x11e   :  { %266 = vsyncadd [#allocation5], 4294967168 }
 0x11f   :  { %162 = vsyncpa [#allocation4], 1 }
 0x120   :  { %163 = vsyncpa [#allocation7], 1 }
 0x121   :  { %164 = vsyncpa [#allocation5], 1 }

</bundles_post_ra>
